<compile_context>
chip_gen: v5e
topology: v5e:2x2
jax: 0.10.0
libtpu: 0.0.40
codegen_flags: <defaults>
</compile_context>

<pallas_src>
import functools

import numpy as np
import jax
import jax.numpy as jnp
from jax.experimental import pallas as pl
from jax.experimental.pallas import tpu as pltpu


def _make_freq_bands(max_freq_log2: float, num_freqs: int, log_sampling: bool = True):
    if log_sampling:
        freqs = 2.0 ** jnp.linspace(0.0, max_freq_log2, num_freqs, dtype=jnp.float32)
    else:
        freqs = jnp.linspace(2.0 ** 0.0, 2.0 ** max_freq_log2, num_freqs,
                             dtype=jnp.float32)
    # Python floats (exact f32 values), baked into host-side constants.
    return tuple(float(f) for f in freqs)


def _build_table(freqs, d):
    """(d+2, out_dim) f32 table.

    Rows 0..d-1 : per-(input-channel, output-column) scale so that
                  xf[:, j] = sum_c x[:, c] * tab[c, j] equals
                      x[:, j]           for identity columns (j < d)
                      x[:, c_j] * f_j   for trig columns
                  Exactly one entry per column is non-zero, so xf is
                  bit-identical to the reference product.
    Row d       : 1.0 where the column is a sin column, else 0.0.
    Row d+1     : 1.0 where the column is an identity column, else 0.0.
    Column order matches PyTorch: [x | sin(f0 x) | cos(f0 x) | sin(f1 x) | ...].
    """
    F = len(freqs)
    out_dim = d * (1 + 2 * F)
    tab = np.zeros((d + 2, out_dim), dtype=np.float32)
    for c in range(d):
        tab[c, c] = 1.0            # identity columns
        tab[d + 1, c] = 1.0        # is_identity selector
    for i, f in enumerate(freqs):
        base = d + 2 * i * d
        for c in range(d):
            tab[c, base + c] = np.float32(f)         # sin block
            tab[c, base + d + c] = np.float32(f)     # cos block
        tab[d, base:base + d] = 1.0                  # is_sin selector
    return jnp.asarray(tab)


def _embedder_kernel(x_ref, tab_ref, o_ref, *, d):
    # x_ref:   (tile_n, d)           VMEM tile
    # tab_ref: (d+2, out_dim)        constant table (same block every step)
    # o_ref:   (tile_n, out_dim)     VMEM tile, out_dim = d*(1+2F)
    x = x_ref[...].astype(jnp.float32)

    # Lane-dense argument build via broadcast multiply-accumulate:
    # (tile,1) * (1,out_dim) per input channel; one non-zero term per column.
    xf = x[:, 0:1] * tab_ref[0:1, :]
    for c in range(1, d):
        xf = xf + x[:, c:c + 1] * tab_ref[c:c + 1, :]

    is_sin = tab_ref[d:d + 1, :] > 0.5        # (1, out_dim) static selectors
    is_id = tab_ref[d + 1:d + 2, :] > 0.5

    # One sin pass + one cos pass over the full lane group (vreg-count optimal
    # for a <128-lane output), then static per-column selects.
    trig = jnp.where(is_sin, jnp.sin(xf), jnp.cos(xf))
    out = jnp.where(is_id, xf, trig)

    # Single full-tile store.
    o_ref[...] = out.astype(o_ref.dtype)


def embedder_forward(x, *, max_freq_log2=10, num_freqs=10, log_sampling=True,
                     tile_n=4096):
    """x: (N, D) float array. Returns (N, D*(1+2*num_freqs)), same dtype as x."""
    n, d = x.shape
    freqs = _make_freq_bands(max_freq_log2, num_freqs, log_sampling)
    F = len(freqs)
    out_dim = d * (1 + 2 * F)
    tab = _build_table(freqs, d)

    # Tile sizing: multiple of 8 rows (sublane axis); pad N so the tile divides it.
    n_pad8 = ((n + 7) // 8) * 8
    tile = min(int(tile_n), n_pad8)
    tile = max(8, (tile // 8) * 8)
    n_pad = ((n + tile - 1) // tile) * tile
    x_in = x if n_pad == n else jnp.pad(x, ((0, n_pad - n), (0, 0)))
    grid = n_pad // tile

    kernel = functools.partial(_embedder_kernel, d=d)

    out = pl.pallas_call(
        kernel,
        out_shape=jax.ShapeDtypeStruct((n_pad, out_dim), x.dtype),
        grid_spec=pltpu.PrefetchScalarGridSpec(
            num_scalar_prefetch=0,
            grid=(grid,),
            in_specs=[
                # Last block dim equals the full array dim (D / out_dim), so
                # the (8,128) constraint is satisfied; row axis is a multiple of 8.
                pl.BlockSpec((tile, d), lambda i: (i, 0)),
                pl.BlockSpec((d + 2, out_dim), lambda i: (0, 0)),
            ],
            out_specs=pl.BlockSpec((tile, out_dim), lambda i: (i, 0)),
        ),
        compiler_params=pltpu.CompilerParams(
            dimension_semantics=("parallel",)),
    )(x_in, tab)

    return out if n_pad == n else out[:n]


def embedder_reference(x, *, max_freq_log2=10, num_freqs=10, log_sampling=True):
    freqs = _make_freq_bands(max_freq_log2, num_freqs, log_sampling)
    xf = x.astype(jnp.float32)
    parts = [xf]
    for f in freqs:
        parts.append(jnp.sin(xf * f))
        parts.append(jnp.cos(xf * f))
    return jnp.concatenate(parts, axis=-1).astype(x.dtype)


if __name__ == "__main__":
    key = jax.random.PRNGKey(0)

    # Small shape consistent with the module (3-D coordinates).
    N, D = 16, 3
    x = jax.random.normal(key, (N, D), dtype=jnp.float32)
    out = jax.block_until_ready(embedder_forward(x))
    ref = embedder_reference(x)
    assert out.shape == (N, D * (1 + 2 * 10)), out.shape
    assert jnp.allclose(out, ref, atol=1e-5, rtol=1e-5), "mismatch vs reference"

    # Ragged N (not a multiple of 8) with a tiny tile to exercise the
    # multi-step grid and the padding / tail path.
    N2 = 100
    x2 = jax.random.normal(jax.random.PRNGKey(1), (N2, D), dtype=jnp.float32)
    out2 = jax.block_until_ready(embedder_forward(x2, tile_n=8))
    ref2 = embedder_reference(x2)
    assert out2.shape == (N2, D * (1 + 2 * 10)), out2.shape
    assert jnp.allclose(out2, ref2, atol=1e-5, rtol=1e-5), "mismatch vs reference (ragged N)"

    print("KERNEL_OK")
</pallas_src>

<mosaic_0001>
module attributes {stable_mosaic.version = 11 : i64} {
  func.func @_embedder_kernel(%arg0: i32, %arg1: memref<16x3xf32, #tpu.memory_space<vmem>>, %arg2: memref<5x63xf32, #tpu.memory_space<vmem>>, %arg3: memref<16x63xf32, #tpu.memory_space<vmem>>) attributes {dimension_semantics = [#tpu.dimension_semantics<parallel>], iteration_bounds = array<i64: 1>, scalar_prefetch = 0 : i64, scratch_operands = 0 : i64, tpu.core_type = #tpu.core_type<tc>, window_params = [{transform_indices = @transform_0, window_bounds = array<i64: 16, 3>}, {pipeline_mode = #tpu.pipeline_mode<synchronous>, transform_indices = @transform_1, window_bounds = array<i64: 5, 63>}, {transform_indices = @transform_2, window_bounds = array<i64: 16, 63>}]} {
    %c0 = arith.constant 0 : index
    %c0_0 = arith.constant 0 : index
    %0 = vector.load %arg1[%c0, %c0_0] : memref<16x3xf32, #tpu.memory_space<vmem>>, vector<16x3xf32>
    %1 = vector.extract_strided_slice %0 {offsets = [0, 0], sizes = [16, 1], strides = [1, 1]} : vector<16x3xf32> to vector<16x1xf32>
    %c0_1 = arith.constant 0 : index
    %c0_2 = arith.constant 0 : index
    %2 = vector.load %arg2[%c0_1, %c0_2] : memref<5x63xf32, #tpu.memory_space<vmem>>, vector<1x63xf32>
    %3 = vector.broadcast %1 : vector<16x1xf32> to vector<16x63xf32>
    %4 = vector.broadcast %2 : vector<1x63xf32> to vector<16x63xf32>
    %5 = arith.mulf %3, %4 : vector<16x63xf32>
    %6 = vector.extract_strided_slice %0 {offsets = [0, 1], sizes = [16, 1], strides = [1, 1]} : vector<16x3xf32> to vector<16x1xf32>
    %c1 = arith.constant 1 : index
    %c0_3 = arith.constant 0 : index
    %7 = vector.load %arg2[%c1, %c0_3] : memref<5x63xf32, #tpu.memory_space<vmem>>, vector<1x63xf32>
    %8 = vector.broadcast %6 : vector<16x1xf32> to vector<16x63xf32>
    %9 = vector.broadcast %7 : vector<1x63xf32> to vector<16x63xf32>
    %10 = arith.mulf %8, %9 : vector<16x63xf32>
    %11 = arith.addf %5, %10 : vector<16x63xf32>
    %12 = vector.extract_strided_slice %0 {offsets = [0, 2], sizes = [16, 1], strides = [1, 1]} : vector<16x3xf32> to vector<16x1xf32>
    %c2 = arith.constant 2 : index
    %c0_4 = arith.constant 0 : index
    %13 = vector.load %arg2[%c2, %c0_4] : memref<5x63xf32, #tpu.memory_space<vmem>>, vector<1x63xf32>
    %14 = vector.broadcast %12 : vector<16x1xf32> to vector<16x63xf32>
    %15 = vector.broadcast %13 : vector<1x63xf32> to vector<16x63xf32>
    %16 = arith.mulf %14, %15 : vector<16x63xf32>
    %17 = arith.addf %11, %16 : vector<16x63xf32>
    %c3 = arith.constant 3 : index
    %c0_5 = arith.constant 0 : index
    %18 = vector.load %arg2[%c3, %c0_5] : memref<5x63xf32, #tpu.memory_space<vmem>>, vector<1x63xf32>
    %cst = arith.constant 5.000000e-01 : f32
    %19 = vector.broadcast %cst : f32 to vector<1x63xf32>
    %20 = arith.cmpf ogt, %18, %19 : vector<1x63xf32>
    %c4 = arith.constant 4 : index
    %c0_6 = arith.constant 0 : index
    %21 = vector.load %arg2[%c4, %c0_6] : memref<5x63xf32, #tpu.memory_space<vmem>>, vector<1x63xf32>
    %cst_7 = arith.constant 5.000000e-01 : f32
    %22 = vector.broadcast %cst_7 : f32 to vector<1x63xf32>
    %23 = arith.cmpf ogt, %21, %22 : vector<1x63xf32>
    %24 = math.sin %17 : vector<16x63xf32>
    %25 = math.cos %17 : vector<16x63xf32>
    %26 = vector.shape_cast %20 : vector<1x63xi1> to vector<1x63xi1>
    %27 = vector.broadcast %26 : vector<1x63xi1> to vector<16x63xi1>
    %28 = arith.select %27, %24, %25 : vector<16x63xi1>, vector<16x63xf32>
    %29 = vector.shape_cast %23 : vector<1x63xi1> to vector<1x63xi1>
    %30 = vector.broadcast %29 : vector<1x63xi1> to vector<16x63xi1>
    %31 = arith.select %30, %17, %28 : vector<16x63xi1>, vector<16x63xf32>
    %c0_8 = arith.constant 0 : index
    %c0_9 = arith.constant 0 : index
    %32 = vector.load %arg3[%c0_8, %c0_9] : memref<16x63xf32, #tpu.memory_space<vmem>>, vector<16x63xf32>
    tpu.vector_store %arg3[%c0_8, %c0_9], %31 {strides = array<i32>} : memref<16x63xf32, #tpu.memory_space<vmem>>, vector<16x63xf32>,
    return
  }
  func.func @transform_0(%arg0: i32) -> (i32, i32) {
    %c0_i32 = arith.constant 0 : i32
    %c0_i32_0 = arith.constant 0 : i32
    return %arg0, %c0_i32 : i32, i32
  }
  func.func @transform_1(%arg0: i32) -> (i32, i32) {
    %c0_i32 = arith.constant 0 : i32
    %c0_i32_0 = arith.constant 0 : i32
    %c0_i32_1 = arith.constant 0 : i32
    return %c0_i32, %c0_i32_0 : i32, i32
  }
  func.func @transform_2(%arg0: i32) -> (i32, i32) {
    %c0_i32 = arith.constant 0 : i32
    %c0_i32_0 = arith.constant 0 : i32
    return %arg0, %c0_i32 : i32, i32
  }
}

</mosaic_0001>

<bundles_post_ra>
// kernel: tpu_custom_call.1
= control target key start
LH: loop header
LB: loop body
LE: loop exit
PB: predicated region body
PF: predicated region fallthrough
CT: control target
= control target key end

     0   :  { %v766_v1 = vmov 1   ;;  %v767_v2 = vmov 0   ;;  %s974_s0 = inlined_call_operand.vmem [shape: f32[16,3], index: 0, kind: input, shape index: {}]   ;;  %s975_s1 = inlined_call_operand.vmem [shape: f32[5,63], index: 1, kind: input, shape index: {}]   ;;  %s976_s2 = inlined_call_operand.hbm [shape: f32[16,63], index: 2, kind: output, shape index: {}]  }
   0x1   :  { %v12_v0 = vld [vmem:[%s974_s0] sm:$0xff]  ;;  %734 = vset.pattern.permute.xlu1 %v766_v1  ;;  %733 = vset.pattern.permute.xlu0 %v767_v2 }
   0x2   :  { %30 = vperm.xlu1 %734, %v12_v0   ;;  %17 = vperm.xlu0 %733, %v12_v0  }
   0x3   :  { %7 = vsyncpa [#allocation3], 0  ;;  %v768_v3 = vmov 2   ;;  %v13_v4 = vld [vmem:[%s974_s0 + $0x8] sm:$0xff]  ;;  %v737_v5 = vld [vmem:[%s975_s1 + $0x2] ss:$0 sm:$0xff] }
   0x4   :  { %735 = vset.pattern.permute.xlu2 %v768_v3  ;;  %v738_v6 = vld [vmem:[%s975_s1 + $0x1] ss:$0 sm:$0xff]  ;;  %v739_v7 = vld [vmem:[%s975_s1] ss:$0 sm:$0xff]  ;;  %v769_v41 = vmov 683565275  }
   0x5   :  { %44 = vperm.xlu2 %735, %v12_v0   ;;  %v770_v43 = vmov 2475754826   ;;  %v771_v47 = vmov 2131351028   ;;  %v772_v50 = vmov 2102212464  }
   0x6   :  { %v773_v53 = vmov 920167782   ;;  %v774_v56 = vmov 1326507024   ;;  %s697_s25 = sshll.u32 %s976_s2, 4  ;;  %s776_s2 = smov 128   ;;  %s698_s25 = int_to_ptr.hbm [resolvable:$true] %s697_s25 }
   0x7   :  { %s777_s26 = smov 8  }
   0xa   :  { %34 = vperm.xlu1 %734, %v13_v4   ;;  %22 = vperm.xlu0 %733, %v13_v4  }
   0xd   :  { %48 = vperm.xlu2 %735, %v13_v4  }
  0x12   :  { %736 = vset.pattern.permute.xlu0 %v768_v3 }
  0x5f   :  { %v45_v8 = vpop.permute.xlu2 %44 }
  0x60   :  { %v52_v11 = vmul.f32 %v737_v5, %v45_v8 }
  0x67   :  { %v49_v22 = vpop.permute.xlu2 %48 }
  0x68   :  { %v53_v27 = vmul.f32 %v737_v5, %v49_v22 }
  0x74   :  { %v31_v9 = vpop.permute.xlu1 %30  ;;  %v18_v10 = vpop.permute.xlu0 %17 }
  0x75   :  { %v38_v12 = vmul.f32 %v738_v6, %v31_v9  ;;  %v26_v13 = vmul.f32 %v739_v7, %v18_v10 }
  0x77   :  { %v40_v14 = vadd.f32 %v38_v12, %v26_v13 }
  0x79   :  { %v809_v15 = vadd.f32 %v52_v11, %v40_v14 }
  0x7b   :  { %v60_v16 = vand.u32 2147483647, %v809_v15  ;;  %v63_v17 = vand.u32 2139095040, %v809_v15 }
  0x7c   :  { %v35_v18 = vpop.permute.xlu1 %34  ;;  %v23_v19 = vpop.permute.xlu0 %22 }
  0x7d   :  { %v64_v20 = vshrl.u32 %v63_v17, 23  ;;  %v67_v21 = vand.u32 8388607, %v60_v16  ;;  %v39_v23 = vmul.f32 %v738_v6, %v35_v18  ;;  %v27_v24 = vmul.f32 %v739_v7, %v23_v19 }
  0x7f   :  { %v709_v25 = vadd.s32 4294967169, %v64_v20  ;;  %v68_v26 = vor.u32 8388608, %v67_v21  ;;  %v41_v28 = vadd.f32 %v39_v23, %v27_v24 }
  0x81   :  { %v70_v29 = vadd.s32 1, %v709_v25  ;;  %v815_v30 = vadd.f32 %v53_v27, %v41_v28  ;;  %v817_v31 = vshll.u32 %v68_v26, 8 }
  0x83   :  { %vm71_vm0 = vcmp.gt.s32.totalorder %v70_v29, 0  ;;  %v215_v33 = vand.u32 2147483647, %v815_v30  ;;  %v218_v34 = vand.u32 2139095040, %v815_v30  ;;  %v109_v37 = vand.u32 65535, %v817_v31 }
  0x84   :  { %v72_v32 = vsel %vm71_vm0, %v70_v29, 0  ;;  %v110_v38 = vshrl.u32 %v817_v31, 16 }
  0x85   :  { %v74_v35 = vand.u32 31, %v72_v32  ;;  %v219_v39 = vshrl.u32 %v218_v34, 23  ;;  %v73_v40 = vshrl.u32 %v72_v32, 5  ;;  %v827_v45 = vand.u32 8388607, %v215_v33 }
  0x87   :  { %v75_v36 = vsub.s32 32, %v74_v35  ;;  %v77_v42 = vshll.u32 %v769_v41, %v74_v35  ;;  %v80_v44 = vshll.u32 %v770_v43, %v74_v35  ;;  %v83_v49 = vshll.u32 %v771_v47, %v74_v35 }
  0x88   :  { %v86_v52 = vshll.u32 %v772_v50, %v74_v35  ;;  %v89_v55 = vshll.u32 %v773_v53, %v74_v35  ;;  %v712_v61 = vadd.s32 4294967169, %v219_v39  ;;  %vm92_vm1 = vcmp.lt.s32.totalorder %v73_v40, 1 }
  0x89   :  { %v78_v46 = vshrl.u32 %v770_v43, %v75_v36  ;;  %v81_v48 = vshrl.u32 %v771_v47, %v75_v36  ;;  %v84_v51 = vshrl.u32 %v772_v50, %v75_v36  ;;  %v87_v54 = vshrl.u32 %v773_v53, %v75_v36 }
  0x8a   :  { %v90_v57 = vshrl.u32 %v774_v56, %v75_v36  ;;  %vm95_vm2 = vcmp.lt.s32.totalorder %v73_v40, 4  ;;  %v76_v0 = vshrl.u32 %v769_v41, %v75_v36  ;;  %vm94_vm3 = vcmp.lt.s32.totalorder %v73_v40, 3 }
  0x8b   :  { %v79_v58 = vor.u32 %v78_v46, %v77_v42  ;;  %v82_v59 = vor.u32 %v81_v48, %v80_v44  ;;  %v85_v60 = vor.u32 %v84_v51, %v83_v49  ;;  %v88_v62 = vor.u32 %v87_v54, %v86_v52 }
  0x8c   :  { %v91_v63 = vor.u32 %v90_v57, %v89_v55  ;;  %v225_v7 = vadd.s32 1, %v712_v61  ;;  %vm93_vm4 = vcmp.lt.s32.totalorder %v73_v40, 2  ;;  %v223_v20 = vor.u32 8388608, %v827_v45 }
  0x8d   :  { %v97_v1 = vsel %vm95_vm2, %v85_v60, 2102212464  ;;  %v100_v3 = vsel %vm92_vm1, %v79_v58, %v82_v59  ;;  %v104_v4 = vsel %vm92_vm1, %v82_v59, %v85_v60  ;;  %v101_v5 = vsel %vm95_vm2, %v88_v62, 920167782 }
  0x8e   :  { %v105_v6 = vsel %vm95_vm2, %v91_v63, 1326507024  ;;  %v96_v8 = vsel %vm92_vm1, %v76_v0, %v79_v58  ;;  %v102_v9 = vsel %vm94_vm3, %v85_v60, %v101_v5  ;;  %v98_v11 = vsel %vm94_vm3, %v82_v59, %v97_v1 }
  0x8f   :  { %v106_v10 = vsel %vm94_vm3, %v88_v62, %v105_v6  ;;  %v103_v12 = vsel %vm93_vm4, %v100_v3, %v102_v9  ;;  %vm226_vm5 = vcmp.gt.s32.totalorder %v225_v7, 0  ;;  %v839_v21 = vsel %vm93_vm4, %v96_v8, %v98_v11 }
  0x90   :  { %v107_v13 = vsel %vm93_vm4, %v104_v4, %v106_v10  ;;  %v133_v18 = vand.u32 65535, %v103_v12  ;;  %v134_v19 = vshrl.u32 %v103_v12, 16  ;;  %v227_v24 = vsel %vm226_vm5, %v225_v7, 0 }
  0x91   :  { %v111_v14 = vand.u32 65535, %v107_v13  ;;  %v112_v17 = vshrl.u32 %v107_v13, 16  ;;  %v229_v46 = vand.u32 31, %v227_v24  ;;  %v846_v57 = vshrl.u32 %v227_v24, 5 }
  0x92   :  { %v136_v27 = vmul.u32 %v134_v19, %v109_v37  ;;  %v137_v28 = vmul.u32 %v133_v18, %v110_v38  ;;  %v135_v34 = vmul.u32 %v133_v18, %v109_v37  ;;  %v138_v35 = vmul.u32 %v134_v19, %v110_v38 }
  0x93   :  { %v114_v22 = vmul.u32 %v112_v17, %v109_v37  ;;  %v115_v23 = vmul.u32 %v111_v14, %v110_v38  ;;  %v113_v25 = vmul.u32 %v111_v14, %v109_v37  ;;  %v116_v26 = vmul.u32 %v112_v17, %v110_v38 }
  0x94   :  { %v139_v40 = vshll.u32 %v136_v27, 16  ;;  %v140_v42 = vshrl.u32 %v136_v27, 16  ;;  %v141_v45 = vshll.u32 %v137_v28, 16  ;;  %v142_v49 = vshrl.u32 %v137_v28, 16 }
  0x95   :  { %v117_v29 = vshll.u32 %v114_v22, 16  ;;  %v118_v32 = vshrl.u32 %v114_v22, 16  ;;  %v119_v36 = vshll.u32 %v115_v23, 16  ;;  %v120_v39 = vshrl.u32 %v115_v23, 16 }
  0x96   :  { %vm143_vm7 = vc.u32 %v135_v34, %v139_v40  ;;  %v145_v51 = vadd.s32 %v139_v40, %v135_v34  ;;  %v843_v55 = vsub.s32 32, %v229_v46  ;;  %v232_v61 = vshll.u32 %v769_v41, %v229_v46 }
  0x97   :  { %vm121_vm6 = vc.u32 %v113_v25, %v117_v29  ;;  %v123_v44 = vadd.s32 %v117_v29, %v113_v25  ;;  %v144_v54 = vsel %vm143_vm7, 1, %v767_v2  ;;  %v235_v0 = vshll.u32 %v770_v43, %v229_v46 }
  0x98   :  { %v122_v48 = vsel %vm121_vm6, 1, %v767_v2  ;;  %v146_v38 = vadd.s32 %v144_v54, %v138_v35  ;;  %vm147_vm9 = vc.u32 %v145_v51, %v141_v45  ;;  %v849_v60 = vadd.s32 %v145_v51, %v141_v45 }
  0x99   :  { %v124_v52 = vadd.s32 %v122_v48, %v116_v26  ;;  %vm125_vm8 = vc.u32 %v123_v44, %v119_v36  ;;  %v148_v59 = vsel %vm147_vm9, 1, %v767_v2  ;;  %v233_v63 = vshrl.u32 %v770_v43, %v843_v55 }
  0x9a   :  { %v126_v37 = vsel %vm125_vm8, 1, %v767_v2  ;;  %v150_v62 = vadd.s32 %v148_v59, %v146_v38  ;;  %v236_v1 = vshrl.u32 %v771_v47, %v843_v55  ;;  %v238_v4 = vshll.u32 %v771_v47, %v229_v46 }
  0x9b   :  { %v128_v58 = vadd.s32 %v126_v37, %v124_v52  ;;  %v239_v5 = vshrl.u32 %v772_v50, %v843_v55  ;;  %v241_v6 = vshll.u32 %v772_v50, %v229_v46  ;;  %v861_v8 = vor.u32 %v233_v63, %v232_v61 }
  0x9c   :  { %v151_v7 = vadd.s32 %v150_v62, %v140_v42  ;;  %v863_v9 = vor.u32 %v236_v1, %v235_v0  ;;  %v242_v10 = vshrl.u32 %v773_v53, %v843_v55  ;;  %v244_v12 = vshll.u32 %v773_v53, %v229_v46 }
  0x9d   :  { %v129_v3 = vadd.s32 %v128_v58, %v118_v32  ;;  %v240_v11 = vor.u32 %v239_v5, %v238_v4  ;;  %v245_v47 = vshrl.u32 %v774_v56, %v843_v55  ;;  %vm247_vm11 = vcmp.lt.s32.totalorder %v846_v57, 1 }
  0x9e   :  { %v152_v13 = vadd.s32 %v151_v7, %v142_v49  ;;  %v243_v14 = vor.u32 %v242_v10, %v241_v6  ;;  %v875_v17 = vshll.u32 %v223_v20, 8  ;;  %v153_v18 = vmul.u32 %v817_v31, %v839_v21 }
  0x9f   :  { %v867_v43 = vadd.s32 %v129_v3, %v120_v39  ;;  %v246_v50 = vor.u32 %v245_v47, %v244_v12  ;;  %vm250_vm12 = vcmp.lt.s32.totalorder %v846_v57, 4  ;;  %v255_v53 = vsel %vm247_vm11, %v861_v8, %v863_v9 }
  0xa0   :  { %v156_v19 = vadd.s32 1, %v152_v13  ;;  %vm249_vm13 = vcmp.lt.s32.totalorder %v846_v57, 3  ;;  %v256_v56 = vsel %vm250_vm12, %v243_v14, 920167782  ;;  %v259_v20 = vsel %vm247_vm11, %v863_v9, %v240_v11 }
  0xa1   :  { %vm155_vm10 = vc.u32 %v867_v43, %v849_v60  ;;  %v260_v31 = vsel %vm250_vm12, %v246_v50, 1326507024  ;;  %vm248_vm14 = vcmp.lt.s32.totalorder %v846_v57, 2  ;;  %v257_v22 = vsel %vm249_vm13, %v240_v11, %v256_v56 }
  0xa2   :  { %v157_v21 = vsel %vm155_vm10, %v156_v19, %v152_v13  ;;  %v261_v23 = vsel %vm249_vm13, %v243_v14, %v260_v31  ;;  %v258_v25 = vsel %vm248_vm14, %v255_v53, %v257_v22  ;;  %v264_v27 = vand.u32 65535, %v875_v17 }
  0xa3   :  { %v158_v24 = vadd.s32 %v157_v21, %v153_v18  ;;  %v262_v26 = vsel %vm248_vm14, %v259_v20, %v261_v23  ;;  %v265_v28 = vshrl.u32 %v875_v17, 16  ;;  %v289_v34 = vshrl.u32 %v258_v25, 16 }
  0xa4   :  { %v266_v29 = vand.u32 65535, %v262_v26  ;;  %v267_v32 = vshrl.u32 %v262_v26, 16  ;;  %v288_v36 = vand.u32 65535, %v258_v25  ;;  %v252_v47 = vsel %vm250_vm12, %v240_v11, 2102212464 }
  0xa5   :  { %v159_v35 = vadd.s32 536870912, %v158_v24  ;;  %v291_v44 = vmul.u32 %v289_v34, %v264_v27  ;;  %v293_v63 = vmul.u32 %v289_v34, %v265_v28  ;;  %v231_v14 = vshrl.u32 %v769_v41, %v843_v55 }
  0xa6   :  { %v269_v39 = vmul.u32 %v267_v32, %v264_v27  ;;  %v270_v40 = vmul.u32 %v266_v29, %v265_v28  ;;  %v268_v45 = vmul.u32 %v266_v29, %v264_v27  ;;  %v271_v49 = vmul.u32 %v267_v32, %v265_v28 }
  0xa7   :  { %v903_v42 = vshrl.u32 %v159_v35, 30  ;;  %v290_v51 = vmul.u32 %v288_v36, %v264_v27  ;;  %v294_v52 = vshll.u32 %v291_v44, 16  ;;  %v292_v38 = vmul.u32 %v288_v36, %v265_v28 }
  0xa8   :  { %v272_v46 = vshll.u32 %v269_v39, 16  ;;  %v274_v54 = vshll.u32 %v270_v40, 16  ;;  %v273_v59 = vshrl.u32 %v269_v39, 16  ;;  %v275_v50 = vshrl.u32 %v270_v40, 16 }
  0xa9   :  { %v161_v48 = vshll.u32 %v903_v42, 30  ;;  %vm298_vm1 = vc.u32 %v290_v51, %v294_v52  ;;  %v296_v5 = vshll.u32 %v292_v38, 16  ;;  %v300_v6 = vadd.s32 %v294_v52, %v290_v51 }
  0xaa   :  { %vm276_vm15 = vc.u32 %v268_v45, %v272_v46  ;;  %v278_v37 = vadd.s32 %v272_v46, %v268_v45  ;;  %v299_v3 = vsel %vm298_vm1, 1, %v767_v2  ;;  %v295_v53 = vshrl.u32 %v291_v44, 16 }
  0xab   :  { %v162_v58 = vsub.s32 %v158_v24, %v161_v48  ;;  %v277_v61 = vsel %vm276_vm15, 1, %v767_v2  ;;  %v301_v7 = vadd.s32 %v299_v3, %v293_v63  ;;  %vm302_vm3 = vc.u32 %v300_v6, %v296_v5  ;;  %v56_v63 = vld [vmem:[%s975_s1 + $0x3] sm:$0x1] }
  0xac   :  { %v279_v62 = vadd.s32 %v277_v61, %v271_v49  ;;  %vm280_vm0 = vc.u32 %v278_v37, %v274_v54  ;;  %v303_v18 = vsel %vm302_vm3, 1, %v767_v2  ;;  %v251_v20 = vsel %vm247_vm11, %v231_v14, %v861_v8 }
  0xad   :  { %vm163_vm2 = vcmp.lt.s32.totalorder %v162_v58, 0  ;;  %v164_v0 = vsub.s32 0, %v162_v58  ;;  %v281_v1 = vsel %vm280_vm0, 1, %v767_v2  ;;  %v305_v56 = vadd.s32 %v303_v18, %v301_v7 }
  0xae   :  { %v283_v4 = vadd.s32 %v281_v1, %v279_v62  ;;  %v253_v31 = vsel %vm249_vm13, %v863_v9, %v252_v47  ;;  %v297_v21 = vshrl.u32 %v292_v38, 16  ;;  %v154_v41 = vadd.s32 %v849_v60, %v867_v43 }
  0xaf   :  { %v165_v10 = vsel %vm163_vm2, %v164_v0, %v162_v58  ;;  %v306_v22 = vadd.s32 %v305_v56, %v295_v53  ;;  %v304_v23 = vadd.s32 %v300_v6, %v296_v5  ;;  %v254_v26 = vsel %vm248_vm14, %v251_v20, %v253_v31  ;;  %v58_v5 = vld [vmem:[%s975_s1 + $0x4] sm:$0x1]  ;;  %s775_s1 = smov [#allocation2]  }
  0xb0   :  { %v166_v12 = vclz %v165_v10  ;;  %v284_v13 = vadd.s32 %v283_v4, %v273_v59  ;;  %v308_v32 = vmul.u32 %v875_v17, %v254_v26  ;;  %vm62_vm6 = vcmp.lt.s32.totalorder %v809_v15, 0  ;;  %s695_s22 = sshll.u32 %s775_s1, 4  ;;  %s696_s22 = int_to_ptr.vmem [resolvable:$true] %s695_s22 }
  0xb1   :  { %v307_v27 = vadd.s32 %v306_v22, %v297_v21  ;;  %v184_v49 = vsub.s32 4, %v903_v42  ;;  %vm61_vm7 = vcmp.le.f32.partialorder %v60_v16, 0.7853982  ;;  %vm57_vm10 = vcmp.gt.f32.partialorder %v56_v63, 0.5 }
  0xb2   :  { %v710_v19 = vadd.s32 4294967294, %v166_v12  ;;  %v285_v11 = vadd.s32 %v284_v13, %v275_v50  ;;  %vm59_vm11 = vcmp.gt.f32.partialorder %v58_v5, 0.5  ;;  %v678_v18 = vsel %vm57_vm10, 1, %v767_v2 }
  0xb3   :  { %v311_v9 = vadd.s32 1, %v307_v27  ;;  %v185_v38 = vsel %vm62_vm6, %v184_v49, %v903_v42  ;;  %vm203_vm3 = vweird.f32 %v809_v15 }
  0xb4   :  { %vm711_vm4 = vcmp.lt.s32.totalorder %v710_v19, 0  ;;  %vm310_vm5 = vc.u32 %v285_v11, %v304_v23  ;;  %v187_v0 = vsel %vm61_vm7, 0, %v185_v38  ;;  %v309_v12 = vadd.s32 %v304_v23, %v285_v11 }
  0xb5   :  { %v169_v55 = vsel %vm711_vm4, 0, %v710_v19  ;;  %v312_v36 = vsel %vm310_vm5, %v311_v9, %v307_v27  ;;  %v204_v7 = vadd.s32 3, %v187_v0  ;;  %v514_v50 = vand.u32 3, %v187_v0 }
  0xb6   :  { %v170_v24 = vsub.s32 32, %v169_v55  ;;  %v174_v25 = vsub.s32 4294967266, %v169_v55  ;;  %v171_v8 = vshll.u32 %v162_v58, %v169_v55  ;;  %v313_v39 = vadd.s32 %v312_v36, %v308_v32 }
  0xb7   :  { %v205_v21 = vand.u32 3, %v204_v7  ;;  %v679_v11 = vperm.slane %v678_v18, 0  ;;  %vm515_vm12 = vcmp.lt.s32.totalorder %v514_v50, 2  ;;  %vm516_vm13 = vcmp.eq.s32.totalorder %v514_v50, 0 }
  0xb8   :  { %v172_v28 = vshrl.u32 %v154_v41, %v170_v24  ;;  %v175_v29 = vadd.s32 127, %v174_v25  ;;  %v314_v43 = vadd.s32 536870912, %v313_v39  ;;  %v683_v24 = vsel %vm59_vm11, 1, %v767_v2 }
  0xb9   :  { %vm519_vm14 = vcmp.eq.s32.totalorder %v514_v50, 2  ;;  %vm210_vm15 = vcmp.eq.s32.totalorder %v205_v21, 2  ;;  %vm206_vm0 = vcmp.lt.s32.totalorder %v205_v21, 2  ;;  %vm207_vm1 = vcmp.eq.s32.totalorder %v205_v21, 0 }
  0xba   :  { %v173_v34 = vor.u32 %v172_v28, %v171_v8  ;;  %v176_v35 = vshll.u32 %v175_v29, 23  ;;  %v925_v45 = vshrl.u32 %v314_v43, 30  ;;  %v684_v8 = vperm.slane %v683_v24, 0 }
  0xbb   :  { %vm942_vm2 = vcmp.eq.s32.totalorder %v679_v11, 1  ;;  %vm688_vm5 = vcmask 515072  }
  0xbc   :  { %v177_v60 = vor.u32 4788187, %v176_v35  ;;  %v180_v44 = vcvt.s32.f32 %v173_v34  ;;  %v316_v46 = vshll.u32 %v925_v45, 30  ;;  %vm948_vm4 = vcmp.eq.s32.totalorder %v684_v8, 1 }
  0xbe   :  { %v178_v40 = vand.u32 2147483647, %v177_v60  ;;  %v317_v51 = vsub.s32 %v313_v39, %v316_v46 }
  0xc0   :  { %v181_v57 = vmul.f32 %v180_v44, %v178_v40  ;;  %vm318_vm8 = vcmp.lt.s32.totalorder %v317_v51, 0  ;;  %v319_v54 = vsub.s32 0, %v317_v51 }
  0xc2   :  { %v182_v48 = vxor.u32 2147483648, %v181_v57  ;;  %v320_v58 = vsel %vm318_vm8, %v319_v54, %v317_v51 }
  0xc3   :  { %v321_v61 = vclz %v320_v58 }
  0xc4   :  { %v183_v17 = vsel %vm62_vm6, %v182_v48, %v181_v57  ;;  %vm217_vm6 = vcmp.lt.s32.totalorder %v815_v30, 0 }
  0xc5   :  { %v186_v52 = vsel %vm61_vm7, %v809_v15, %v183_v17  ;;  %v713_v3 = vadd.s32 4294967294, %v321_v61  ;;  %vm216_vm7 = vcmp.le.f32.partialorder %v215_v33, 0.7853982 }
  0xc6   :  { %v188_v37 = vmul.f32 %v186_v52, %v186_v52 }
  0xc7   :  { %vm714_vm9 = vcmp.lt.s32.totalorder %v713_v3, 0 }
  0xc8   :  { %v196_v59 = vmul.f32 -0.00019511016, %v188_v37  ;;  %v189_v62 = vmul.f32 -0.001358992, %v188_v37  ;;  %v324_v6 = vsel %vm714_vm9, 0, %v713_v3 }
  0xc9   :  { %v325_v47 = vsub.s32 32, %v324_v6  ;;  %v329_v13 = vsub.s32 4294967266, %v324_v6  ;;  %v326_v53 = vshll.u32 %v317_v51, %v324_v6  ;;  %v339_v51 = vsub.s32 4, %v925_v45 }
  0xca   :  { %v197_v1 = vadd.f32 0.008332121, %v196_v59  ;;  %v190_v16 = vadd.f32 0.041655596, %v189_v62 }
  0xcb   :  { %v327_v56 = vshrl.u32 %v309_v12, %v325_v47  ;;  %v330_v20 = vadd.s32 127, %v329_v13 }
  0xcc   :  { %v198_v4 = vmul.f32 %v197_v1, %v188_v37  ;;  %v191_v42 = vmul.f32 %v190_v16, %v188_v37 }
  0xcd   :  { %v328_v41 = vor.u32 %v327_v56, %v326_v53  ;;  %v331_v55 = vshll.u32 %v330_v20, 23 }
  0xce   :  { %v199_v10 = vadd.f32 -0.16666654, %v198_v4  ;;  %v192_v14 = vadd.f32 -0.4999988, %v191_v42 }
  0xcf   :  { %v332_v26 = vor.u32 4788187, %v331_v55  ;;  %v335_v29 = vcvt.s32.f32 %v328_v41 }
  0xd0   :  { %v200_v19 = vmul.f32 %v199_v10, %v188_v37  ;;  %v193_v31 = vmul.f32 %v192_v14, %v188_v37  ;;  %v340_v37 = vsel %vm217_vm6, %v339_v51, %v925_v45 }
  0xd1   :  { %v333_v28 = vand.u32 2147483647, %v332_v26  ;;  %v342_v62 = vsel %vm216_vm7, 0, %v340_v37 }
  0xd2   :  { %v201_v22 = vadd.f32 1.0, %v200_v19  ;;  %v194_v25 = vadd.f32 1.0, %v193_v31  ;;  %v359_v3 = vadd.s32 3, %v342_v62  ;;  %v668_v6 = vand.u32 3, %v342_v62 }
  0xd3   :  { %v336_v2 = vmul.f32 %v335_v29, %v333_v28 }
  0xd4   :  { %v202_v23 = vmul.f32 %v201_v22, %v186_v52  ;;  %v211_v27 = vxor.u32 2147483648, %v194_v25  ;;  %v360_v42 = vand.u32 3, %v359_v3  ;;  %vm669_vm11 = vcmp.lt.s32.totalorder %v668_v6, 2 }
  0xd5   :  { %v337_v44 = vxor.u32 2147483648, %v336_v2 }
  0xd6   :  { %v208_v9 = vxor.u32 2147483648, %v202_v23  ;;  %v212_v32 = vsel %vm210_vm15, %v211_v27, %v202_v23  ;;  %v521_v39 = vsel %vm519_vm14, %v211_v27, %v202_v23  ;;  %vm361_vm8 = vcmp.lt.s32.totalorder %v360_v42, 2 }
  0xd7   :  { %v338_v49 = vsel %vm217_vm6, %v337_v44, %v336_v2  ;;  %vm362_vm9 = vcmp.eq.s32.totalorder %v360_v42, 0  ;;  %vm365_vm10 = vcmp.eq.s32.totalorder %v360_v42, 2  ;;  %vm358_vm14 = vweird.f32 %v815_v30 }
  0xd8   :  { %v209_v35 = vsel %vm207_vm1, %v194_v25, %v208_v9  ;;  %v518_v36 = vsel %vm516_vm13, %v194_v25, %v208_v9  ;;  %v341_v52 = vsel %vm216_vm7, %v815_v30, %v338_v49  ;;  %vm673_vm13 = vcmp.eq.s32.totalorder %v668_v6, 2 }
  0xd9   :  { %v213_v60 = vsel %vm206_vm0, %v209_v35, %v212_v32  ;;  %v522_v43 = vsel %vm515_vm12, %v518_v36, %v521_v39  ;;  %v343_v54 = vmul.f32 %v341_v52, %v341_v52  ;;  %vm670_vm12 = vcmp.eq.s32.totalorder %v668_v6, 0 }
  0xda   :  { %v214_v57 = vsel %vm203_vm3, nan, %v213_v60  ;;  %v523_v46 = vsel %vm203_vm3, nan, %v522_v43 }
  0xdb   :  { %v681_v48 = vsel %vm942_vm2, %v214_v57, %v523_v46  ;;  %v351_v38 = vmul.f32 -0.00019511016, %v343_v54  ;;  %v344_v58 = vmul.f32 -0.001358992, %v343_v54 }
  0xdc   :  { %v686_v17 = vsel %vm948_vm4, %v809_v15, %v681_v48 }
  0xdd   :  { %689 = vst.msk [vmem:[#allocation2] sm:$0xff] %vm688_vm5, %v686_v17  ;;  %v352_v59 = vadd.f32 0.008332121, %v351_v38  ;;  %v345_v61 = vadd.f32 0.041655596, %v344_v58 }
  0xdf   :  { %v353_v33 = vmul.f32 %v352_v59, %v343_v54  ;;  %v346_v63 = vmul.f32 %v345_v61, %v343_v54 }
  0xe1   :  { %v354_v0 = vadd.f32 -0.16666654, %v353_v33  ;;  %v347_v1 = vadd.f32 -0.4999988, %v346_v63 }
  0xe3   :  { %v355_v16 = vmul.f32 %v354_v0, %v343_v54  ;;  %v348_v4 = vmul.f32 %v347_v1, %v343_v54 }
  0xe5   :  { %v356_v15 = vadd.f32 1.0, %v355_v16  ;;  %v349_v5 = vadd.f32 1.0, %v348_v4 }
  0xe7   :  { %v357_v7 = vmul.f32 %v356_v15, %v341_v52  ;;  %v366_v10 = vxor.u32 2147483648, %v349_v5 }
  0xe9   :  { %v363_v45 = vxor.u32 2147483648, %v357_v7  ;;  %v367_v47 = vsel %vm365_vm10, %v366_v10, %v357_v7  ;;  %v675_v14 = vsel %vm673_vm13, %v366_v10, %v357_v7 }
  0xeb   :  { %v364_v12 = vsel %vm362_vm9, %v349_v5, %v363_v45  ;;  %v672_v13 = vsel %vm670_vm12, %v349_v5, %v363_v45 }
  0xec   :  { %v368_v50 = vsel %vm361_vm8, %v364_v12, %v367_v47  ;;  %v676_v18 = vsel %vm669_vm11, %v672_v13, %v675_v14 }
  0xed   :  { %v369_v19 = vsel %vm358_vm14, nan, %v368_v50  ;;  %v677_v53 = vsel %vm358_vm14, nan, %v676_v18 }
  0xee   :  { %v682_v56 = vsel %vm942_vm2, %v369_v19, %v677_v53 }
  0xef   :  { %v687_v20 = vsel %vm948_vm4, %v815_v30, %v682_v56 }
  0xf0   :  { %690 = vst.msk [vmem:[#allocation2 + $0x8] sm:$0xff] %vm688_vm5, %v687_v20 }
  0xf1   :  { %703 = dma.vmem_to_hbm [thread:$0]  %s696_s22, 256, %s698_s25, [#allocation3], %s776_s2, %s776_s2, %s777_s26  }
  0xf2   :  { %764 = dma.done.wait [#allocation3], 256  }
  0xf3   :  { %765 = vsyncadd [#allocation3], 4294967040 }
  0xf4   :  { %708 = vsyncpa [#allocation3], 1 }

</bundles_post_ra>
